<compile_context>
chip_gen: v5e
topology: v5e:2x2
jax: 0.10.0
libtpu: 0.0.40
codegen_flags: <defaults>
</compile_context>

<pallas_src>
import functools

import jax
import jax.numpy as jnp
from jax.experimental import pallas as pl
from jax.experimental.pallas import tpu as pltpu

BN_EPS = 1e-5
NEG_SLOPE = 0.2

# Conv hyper-parameters fixed by the PyTorch module.
K1, S1, PAD1 = 5, 5, 2    # conv1:   Conv1d(1, C, k=5, pad=2, stride=5)
K2, S2 = 5, 4             # conv2:   Conv1d(C, C, k=5, pad=0, stride=4)
K3, S3 = 4, 2             # conv3:   Conv1d(C, C, k=4, pad=0, stride=2)

LANE = 128                # lane width: pad output channels to this
TB_MAX = 8                # batch rows per grid step


# ------------------------------ fused kernel ------------------------------- #

def _fused_kernel(p1_ref, w1_ref, w2_ref, w3_ref, w4_ref, shift_ref,
                  o_ref, cat_ref, *, TB, Cp, T1, T2, T3, LC):
    """One batch tile: all four conv+BN+LeakyReLU stages plus the concat.

    p1_ref:    (TB*T1, K1)   stage-1 im2col patches (pad+reshape, Ci == 1)
    w1_ref:    (K1, Cp)      conv1 weight, BN scale folded, bf16
    w2_ref:    (K2, Cp, Cp)  conv2 weight per tap, BN scale folded, bf16
    w3_ref:    (K3, Cp, Cp)  conv3 weight per tap, BN scale folded, bf16
    w4_ref:    (Cp, Cp)      1x1 conv weight, BN scale folded, bf16
    shift_ref: (4, Cp)       folded BN shift per stage (zero on padded lanes)
    o_ref:     (TB*LC, Cp)   output tile (concat layout, batch-major rows)
    cat_ref:   (TB*LC, Cp)   VMEM scratch holding [x1 | x2 | x3] per batch row
    """

    def shift_lrelu(z, i):
        z = z + shift_ref[i:i + 1, :]
        return jnp.maximum(z, NEG_SLOPE * z)

    # ---- stage 1: single MXU GEMM, batch folded into M (BN scale pre-folded).
    x1 = shift_lrelu(
        jnp.dot(p1_ref[...].astype(jnp.bfloat16), w1_ref[...],
                preferred_element_type=jnp.float32), 0)            # (TB*T1, Cp)
    for b in range(TB):
        cat_ref[pl.ds(b * LC, T1), :] = x1[b * T1:(b + 1) * T1]

    # ---- stages 2/3: per tap, strided sublane reads of the VMEM-resident
    #      previous activation + one accumulating (Cp x Cp) bf16 GEMM.
    #      No lane-axis concat; batch is folded into the GEMM M dimension.
    def tap(k, off, T, S):
        rows = [cat_ref[pl.ds(b * LC + off + k, T, stride=S), :]
                for b in range(TB)]
        return jnp.concatenate(rows, axis=0).astype(jnp.bfloat16)  # (TB*T, Cp)

    z2 = jnp.zeros((TB * T2, Cp), jnp.float32)
    for k in range(K2):
        z2 += jnp.dot(tap(k, 0, T2, S2), w2_ref[k],
                      preferred_element_type=jnp.float32)
    x2 = shift_lrelu(z2, 1)
    for b in range(TB):
        cat_ref[pl.ds(b * LC + T1, T2), :] = x2[b * T2:(b + 1) * T2]

    z3 = jnp.zeros((TB * T3, Cp), jnp.float32)
    for k in range(K3):
        z3 += jnp.dot(tap(k, T1, T3, S3), w3_ref[k],
                      preferred_element_type=jnp.float32)
    x3 = shift_lrelu(z3, 2)
    for b in range(TB):
        cat_ref[pl.ds(b * LC + T1 + T2, T3), :] = x3[b * T3:(b + 1) * T3]

    # ---- stage 4: 1x1 conv over the already-concatenated sequence; one
    #      lane-dense (Cp = 128) output store for the whole tile.
    y = shift_lrelu(
        jnp.dot(cat_ref[...].astype(jnp.bfloat16), w4_ref[...],
                preferred_element_type=jnp.float32), 3)            # (TB*LC, Cp)
    o_ref[...] = y.astype(o_ref.dtype)


# ------------------------------ JAX wrapper -------------------------------- #

def octree_key_conv_forward(x, params, channel):
    """x: (B, 1, L) exactly like the PyTorch module.  Returns (B, Lc, C)."""
    B, _, L = x.shape
    Cp = params["w4"].shape[1]
    T1 = (L + 2 * PAD1 - K1) // S1 + 1
    T2 = (T1 - K2) // S2 + 1
    T3 = (T2 - K3) // S3 + 1
    LC = T1 + T2 + T3

    # Batch tile size: whole batch if small, else a divisor of B that keeps
    # the 2-D blocks sublane-aligned; fall back to a single tile otherwise.
    if B <= TB_MAX:
        TB = B
    else:
        TB = 0
        for t in range(TB_MAX, 0, -1):
            if B % t == 0 and (t * T1) % 8 == 0 and (t * LC) % 8 == 0:
                TB = t
                break
        if TB == 0:
            TB = B
    nb = B // TB

    # Stage-1 im2col is a pure pad + reshape (K1 == S1, Ci == 1): no gather.
    xp = jnp.pad(x[:, 0, :].astype(jnp.float32), ((0, 0), (PAD1, PAD1)))
    p1 = xp[:, :T1 * K1].reshape(B * T1, K1)

    flops = 2 * B * Cp * (T1 * K1 + T2 * K2 * Cp + T3 * K3 * Cp + LC * Cp)
    bytes_accessed = (4 * (p1.size + params["shift"].size + B * LC * Cp)
                      + 2 * (params["w1"].size + params["w2"].size
                             + params["w3"].size + params["w4"].size))

    kernel = functools.partial(_fused_kernel, TB=TB, Cp=Cp,
                               T1=T1, T2=T2, T3=T3, LC=LC)

    out2d = pl.pallas_call(
        kernel,
        out_shape=jax.ShapeDtypeStruct((B * LC, Cp), jnp.float32),
        grid_spec=pltpu.PrefetchScalarGridSpec(
            num_scalar_prefetch=0,
            grid=(nb,),
            in_specs=[
                pl.BlockSpec((TB * T1, K1), lambda i: (i, 0)),
                pl.BlockSpec((K1, Cp), lambda i: (0, 0)),
                pl.BlockSpec((K2, Cp, Cp), lambda i: (0, 0, 0)),
                pl.BlockSpec((K3, Cp, Cp), lambda i: (0, 0, 0)),
                pl.BlockSpec((Cp, Cp), lambda i: (0, 0)),
                pl.BlockSpec((4, Cp), lambda i: (0, 0)),
            ],
            out_specs=pl.BlockSpec((TB * LC, Cp), lambda i: (i, 0)),
            scratch_shapes=[pltpu.VMEM((TB * LC, Cp), jnp.float32)],
        ),
        compiler_params=pltpu.CompilerParams(
            dimension_semantics=("parallel",),
            vmem_limit_bytes=32 * 1024 * 1024),
        cost_estimate=pl.CostEstimate(flops=flops, transcendentals=0,
                                      bytes_accessed=bytes_accessed),
    )(p1, params["w1"], params["w2"], params["w3"], params["w4"],
      params["shift"])

    # Row-major reshape of the lane-contiguous (B*Lc, Cp) slab; the PyTorch
    # permute(0, 2, 1) is a no-op in this channels-last layout.  Padded lanes
    # (>= channel) are exactly zero and are sliced off here.
    return out2d.reshape(B, LC, Cp)[:, :, :channel]


# -------------------------- parameter preparation -------------------------- #

def _conv_w_to_taps(w, scale, Cp):
    """PyTorch Conv1d weight (Co, Ci, K) -> (K, Cp, Cp) bf16, BN scale folded
    into the output-channel columns, zero-padded to the lane width."""
    Co, Ci, K = w.shape
    wt = jnp.transpose(w, (2, 1, 0)) * scale[None, None, :]        # (K, Ci, Co)
    wt = jnp.pad(wt, ((0, 0), (0, Cp - Ci), (0, Cp - Co)))
    return wt.astype(jnp.bfloat16)


def prepare_kernel_params(raw, lane=LANE):
    C = raw["w1"].shape[0]
    Cp = max(lane, ((C + lane - 1) // lane) * lane)
    scales, shifts = [], []
    for i in (1, 2, 3, 4):
        gamma, beta, mean, var = raw[f"bn{i}"]
        s = gamma / jnp.sqrt(var + BN_EPS)
        scales.append(s)
        shifts.append(beta - mean * s)

    w1 = jnp.transpose(raw["w1"][:, 0, :], (1, 0)) * scales[0][None, :]  # (K1, C)
    return {
        "w1": jnp.pad(w1, ((0, 0), (0, Cp - C))).astype(jnp.bfloat16),
        "w2": _conv_w_to_taps(raw["w2"], scales[1], Cp),
        "w3": _conv_w_to_taps(raw["w3"], scales[2], Cp),
        "w4": _conv_w_to_taps(raw["w4"], scales[3], Cp)[0],              # (Cp, Cp)
        "shift": jnp.pad(jnp.stack(shifts),
                         ((0, 0), (0, Cp - C))).astype(jnp.float32),     # (4, Cp)
    }


def init_raw_params(key, channel):
    ks = jax.random.split(key, 20)

    def bn_params(kg, kb, km, kv):
        gamma = 1.0 + 0.1 * jax.random.normal(kg, (channel,), jnp.float32)
        beta = 0.1 * jax.random.normal(kb, (channel,), jnp.float32)
        mean = 0.1 * jax.random.normal(km, (channel,), jnp.float32)
        var = jax.random.uniform(kv, (channel,), jnp.float32, 0.5, 1.5)
        return (gamma, beta, mean, var)

    return {
        "w1": 0.1 * jax.random.normal(ks[0], (channel, 1, 5), jnp.float32),
        "w2": 0.1 * jax.random.normal(ks[1], (channel, channel, 5), jnp.float32),
        "w3": 0.1 * jax.random.normal(ks[2], (channel, channel, 4), jnp.float32),
        "w4": 0.1 * jax.random.normal(ks[3], (channel, channel, 1), jnp.float32),
        "bn1": bn_params(ks[4], ks[5], ks[6], ks[7]),
        "bn2": bn_params(ks[8], ks[9], ks[10], ks[11]),
        "bn3": bn_params(ks[12], ks[13], ks[14], ks[15]),
        "bn4": bn_params(ks[16], ks[17], ks[18], ks[19]),
    }


# ---------------------------- pure-JAX reference --------------------------- #

def ref_forward(x, raw):
    def block(h, w, bn, stride, pad):
        gamma, beta, mean, var = bn
        y = jax.lax.conv_general_dilated(
            h, w, window_strides=(stride,), padding=[(pad, pad)],
            dimension_numbers=("NCH", "OIH", "NCH"))
        scale = gamma / jnp.sqrt(var + BN_EPS)
        shift = beta - mean * scale
        y = y * scale[None, :, None] + shift[None, :, None]
        return jnp.where(y > 0, y, NEG_SLOPE * y)

    x1 = block(x, raw["w1"], raw["bn1"], 5, 2)
    x2 = block(x1, raw["w2"], raw["bn2"], 4, 0)
    x3 = block(x2, raw["w3"], raw["bn3"], 2, 0)
    xc = jnp.concatenate([x1, x2, x3], axis=2)
    y = block(xc, raw["w4"], raw["bn4"], 1, 0)
    return jnp.transpose(y, (0, 2, 1))


# --------------------------------- main ------------------------------------ #

if __name__ == "__main__":
    B, C, L = 2, 32, 160   # -> T1=32, T2=7, T3=2, Lc=41
    key = jax.random.PRNGKey(0)
    kx, kp = jax.random.split(key)

    x = jax.random.normal(kx, (B, 1, L), dtype=jnp.float32)
    raw = init_raw_params(kp, C)
    params = prepare_kernel_params(raw)

    fwd = jax.jit(functools.partial(octree_key_conv_forward,
                                    params=params, channel=C))
    out = jax.block_until_ready(fwd(x))
    assert out.shape == (B, 41, C), out.shape

    ref = jax.block_until_ready(ref_forward(x, raw))
    assert ref.shape == out.shape
    max_err = float(jnp.max(jnp.abs(out - ref)))
    # bf16 MXU operands with f32 accumulation across 4 stacked conv stages:
    # allow a few 1e-2 of absolute error vs the pure-f32 reference.
    assert max_err < 5e-2, f"mismatch vs reference: {max_err}"

    print("KERNEL_OK")
</pallas_src>

<mosaic_0001>
module attributes {stable_mosaic.version = 11 : i64} {
  func.func @_fused_kernel(%arg0: i32, %arg1: memref<64x5xf32, #tpu.memory_space<vmem>>, %arg2: memref<5x128xbf16, #tpu.memory_space<vmem>>, %arg3: memref<5x128x128xbf16, #tpu.memory_space<vmem>>, %arg4: memref<4x128x128xbf16, #tpu.memory_space<vmem>>, %arg5: memref<128x128xbf16, #tpu.memory_space<vmem>>, %arg6: memref<4x128xf32, #tpu.memory_space<vmem>>, %arg7: memref<82x128xf32, #tpu.memory_space<vmem>>, %arg8: memref<82x128xf32, #tpu.memory_space<vmem>>) attributes {dimension_semantics = [#tpu.dimension_semantics<parallel>], iteration_bounds = array<i64: 1>, scalar_prefetch = 0 : i64, scratch_operands = 1 : i64, tpu.core_type = #tpu.core_type<tc>, window_params = [{transform_indices = @transform_0, window_bounds = array<i64: 64, 5>}, {pipeline_mode = #tpu.pipeline_mode<synchronous>, transform_indices = @transform_1, window_bounds = array<i64: 5, 128>}, {pipeline_mode = #tpu.pipeline_mode<synchronous>, transform_indices = @transform_2, window_bounds = array<i64: 5, 128, 128>}, {pipeline_mode = #tpu.pipeline_mode<synchronous>, transform_indices = @transform_3, window_bounds = array<i64: 4, 128, 128>}, {pipeline_mode = #tpu.pipeline_mode<synchronous>, transform_indices = @transform_4, window_bounds = array<i64: 128, 128>}, {pipeline_mode = #tpu.pipeline_mode<synchronous>, transform_indices = @transform_5, window_bounds = array<i64: 4, 128>}, {transform_indices = @transform_6, window_bounds = array<i64: 82, 128>}]} {
    %c0 = arith.constant 0 : index
    %c0_0 = arith.constant 0 : index
    %0 = vector.load %arg1[%c0, %c0_0] : memref<64x5xf32, #tpu.memory_space<vmem>>, vector<64x5xf32>
    %1 = arith.truncf %0 : vector<64x5xf32> to vector<64x5xbf16>
    %c0_1 = arith.constant 0 : index
    %c0_2 = arith.constant 0 : index
    %2 = vector.load %arg2[%c0_1, %c0_2] : memref<5x128xbf16, #tpu.memory_space<vmem>>, vector<5x128xbf16>
    %cst = arith.constant dense<0.000000e+00> : vector<64x128xf32>
    %3 = tpu.matmul %1, %2, %cst {dimension_numbers = #tpu.dot_dimension_numbers<[1], [0], [0], [1], [0, 0, 1, 1], [], []>} : vector<64x5xbf16>, vector<5x128xbf16>, vector<64x128xf32> -> vector<64x128xf32>
    %c0_3 = arith.constant 0 : index
    %c0_4 = arith.constant 0 : index
    %4 = vector.load %arg6[%c0_3, %c0_4] : memref<4x128xf32, #tpu.memory_space<vmem>>, vector<1x128xf32>
    %5 = vector.broadcast %4 : vector<1x128xf32> to vector<64x128xf32>
    %6 = arith.addf %3, %5 : vector<64x128xf32>
    %cst_5 = arith.constant 2.000000e-01 : f32
    %7 = vector.broadcast %cst_5 : f32 to vector<64x128xf32>
    %8 = arith.mulf %7, %6 : vector<64x128xf32>
    %9 = arith.maximumf %6, %8 : vector<64x128xf32>
    %10 = vector.extract_strided_slice %9 {offsets = [0, 0], sizes = [32, 128], strides = [1, 1]} : vector<64x128xf32> to vector<32x128xf32>
    %c0_6 = arith.constant 0 : index
    %c0_7 = arith.constant 0 : index
    %11 = vector.load %arg8[%c0_6, %c0_7] : memref<82x128xf32, #tpu.memory_space<vmem>>, vector<32x128xf32>
    tpu.vector_store %arg8[%c0_6, %c0_7], %10 {strides = array<i32>} : memref<82x128xf32, #tpu.memory_space<vmem>>, vector<32x128xf32>,
    %12 = vector.extract_strided_slice %9 {offsets = [32, 0], sizes = [32, 128], strides = [1, 1]} : vector<64x128xf32> to vector<32x128xf32>
    %c41 = arith.constant 41 : index
    %c0_8 = arith.constant 0 : index
    %13 = vector.load %arg8[%c41, %c0_8] : memref<82x128xf32, #tpu.memory_space<vmem>>, vector<32x128xf32>
    tpu.vector_store %arg8[%c41, %c0_8], %12 {strides = array<i32>} : memref<82x128xf32, #tpu.memory_space<vmem>>, vector<32x128xf32>,
    %cst_9 = arith.constant 0.000000e+00 : f32
    %14 = vector.broadcast %cst_9 : f32 to vector<14x128xf32>
    %c0_10 = arith.constant 0 : index
    %c0_11 = arith.constant 0 : index
    %15 = tpu.strided_load %arg8[%c0_10, %c0_11] {strides = array<i32: 4, 1>} : memref<82x128xf32, #tpu.memory_space<vmem>>, vector<7x128xf32>
    %c41_12 = arith.constant 41 : index
    %c0_13 = arith.constant 0 : index
    %16 = tpu.strided_load %arg8[%c41_12, %c0_13] {strides = array<i32: 4, 1>} : memref<82x128xf32, #tpu.memory_space<vmem>>, vector<7x128xf32>
    %17 = tpu.concatenate %15, %16 in 0 : vector<7x128xf32>, vector<7x128xf32> -> vector<14x128xf32>
    %18 = arith.truncf %17 : vector<14x128xf32> to vector<14x128xbf16>
    %c0_14 = arith.constant 0 : index
    %c0_15 = arith.constant 0 : index
    %c0_16 = arith.constant 0 : index
    %19 = vector.load %arg3[%c0_14, %c0_15, %c0_16] : memref<5x128x128xbf16, #tpu.memory_space<vmem>>, vector<1x128x128xbf16>
    %20 = vector.shape_cast %19 : vector<1x128x128xbf16> to vector<128x128xbf16>
    %cst_17 = arith.constant dense<0.000000e+00> : vector<14x128xf32>
    %21 = tpu.matmul %18, %20, %cst_17 {dimension_numbers = #tpu.dot_dimension_numbers<[1], [0], [0], [1], [0, 0, 1, 1], [], []>} : vector<14x128xbf16>, vector<128x128xbf16>, vector<14x128xf32> -> vector<14x128xf32>
    %22 = arith.addf %14, %21 : vector<14x128xf32>
    %c1 = arith.constant 1 : index
    %c0_18 = arith.constant 0 : index
    %23 = tpu.strided_load %arg8[%c1, %c0_18] {strides = array<i32: 4, 1>} : memref<82x128xf32, #tpu.memory_space<vmem>>, vector<7x128xf32>
    %c42 = arith.constant 42 : index
    %c0_19 = arith.constant 0 : index
    %24 = tpu.strided_load %arg8[%c42, %c0_19] {strides = array<i32: 4, 1>} : memref<82x128xf32, #tpu.memory_space<vmem>>, vector<7x128xf32>
    %25 = tpu.concatenate %23, %24 in 0 : vector<7x128xf32>, vector<7x128xf32> -> vector<14x128xf32>
    %26 = arith.truncf %25 : vector<14x128xf32> to vector<14x128xbf16>
    %c1_20 = arith.constant 1 : index
    %c0_21 = arith.constant 0 : index
    %c0_22 = arith.constant 0 : index
    %27 = vector.load %arg3[%c1_20, %c0_21, %c0_22] : memref<5x128x128xbf16, #tpu.memory_space<vmem>>, vector<1x128x128xbf16>
    %28 = vector.shape_cast %27 : vector<1x128x128xbf16> to vector<128x128xbf16>
    %cst_23 = arith.constant dense<0.000000e+00> : vector<14x128xf32>
    %29 = tpu.matmul %26, %28, %cst_23 {dimension_numbers = #tpu.dot_dimension_numbers<[1], [0], [0], [1], [0, 0, 1, 1], [], []>} : vector<14x128xbf16>, vector<128x128xbf16>, vector<14x128xf32> -> vector<14x128xf32>
    %30 = arith.addf %22, %29 : vector<14x128xf32>
    %c2 = arith.constant 2 : index
    %c0_24 = arith.constant 0 : index
    %31 = tpu.strided_load %arg8[%c2, %c0_24] {strides = array<i32: 4, 1>} : memref<82x128xf32, #tpu.memory_space<vmem>>, vector<7x128xf32>
    %c43 = arith.constant 43 : index
    %c0_25 = arith.constant 0 : index
    %32 = tpu.strided_load %arg8[%c43, %c0_25] {strides = array<i32: 4, 1>} : memref<82x128xf32, #tpu.memory_space<vmem>>, vector<7x128xf32>
    %33 = tpu.concatenate %31, %32 in 0 : vector<7x128xf32>, vector<7x128xf32> -> vector<14x128xf32>
    %34 = arith.truncf %33 : vector<14x128xf32> to vector<14x128xbf16>
    %c2_26 = arith.constant 2 : index
    %c0_27 = arith.constant 0 : index
    %c0_28 = arith.constant 0 : index
    %35 = vector.load %arg3[%c2_26, %c0_27, %c0_28] : memref<5x128x128xbf16, #tpu.memory_space<vmem>>, vector<1x128x128xbf16>
    %36 = vector.shape_cast %35 : vector<1x128x128xbf16> to vector<128x128xbf16>
    %cst_29 = arith.constant dense<0.000000e+00> : vector<14x128xf32>
    %37 = tpu.matmul %34, %36, %cst_29 {dimension_numbers = #tpu.dot_dimension_numbers<[1], [0], [0], [1], [0, 0, 1, 1], [], []>} : vector<14x128xbf16>, vector<128x128xbf16>, vector<14x128xf32> -> vector<14x128xf32>
    %38 = arith.addf %30, %37 : vector<14x128xf32>
    %c3 = arith.constant 3 : index
    %c0_30 = arith.constant 0 : index
    %39 = tpu.strided_load %arg8[%c3, %c0_30] {strides = array<i32: 4, 1>} : memref<82x128xf32, #tpu.memory_space<vmem>>, vector<7x128xf32>
    %c44 = arith.constant 44 : index
    %c0_31 = arith.constant 0 : index
    %40 = tpu.strided_load %arg8[%c44, %c0_31] {strides = array<i32: 4, 1>} : memref<82x128xf32, #tpu.memory_space<vmem>>, vector<7x128xf32>
    %41 = tpu.concatenate %39, %40 in 0 : vector<7x128xf32>, vector<7x128xf32> -> vector<14x128xf32>
    %42 = arith.truncf %41 : vector<14x128xf32> to vector<14x128xbf16>
    %c3_32 = arith.constant 3 : index
    %c0_33 = arith.constant 0 : index
    %c0_34 = arith.constant 0 : index
    %43 = vector.load %arg3[%c3_32, %c0_33, %c0_34] : memref<5x128x128xbf16, #tpu.memory_space<vmem>>, vector<1x128x128xbf16>
    %44 = vector.shape_cast %43 : vector<1x128x128xbf16> to vector<128x128xbf16>
    %cst_35 = arith.constant dense<0.000000e+00> : vector<14x128xf32>
    %45 = tpu.matmul %42, %44, %cst_35 {dimension_numbers = #tpu.dot_dimension_numbers<[1], [0], [0], [1], [0, 0, 1, 1], [], []>} : vector<14x128xbf16>, vector<128x128xbf16>, vector<14x128xf32> -> vector<14x128xf32>
    %46 = arith.addf %38, %45 : vector<14x128xf32>
    %c4 = arith.constant 4 : index
    %c0_36 = arith.constant 0 : index
    %47 = tpu.strided_load %arg8[%c4, %c0_36] {strides = array<i32: 4, 1>} : memref<82x128xf32, #tpu.memory_space<vmem>>, vector<7x128xf32>
    %c45 = arith.constant 45 : index
    %c0_37 = arith.constant 0 : index
    %48 = tpu.strided_load %arg8[%c45, %c0_37] {strides = array<i32: 4, 1>} : memref<82x128xf32, #tpu.memory_space<vmem>>, vector<7x128xf32>
    %49 = tpu.concatenate %47, %48 in 0 : vector<7x128xf32>, vector<7x128xf32> -> vector<14x128xf32>
    %50 = arith.truncf %49 : vector<14x128xf32> to vector<14x128xbf16>
    %c4_38 = arith.constant 4 : index
    %c0_39 = arith.constant 0 : index
    %c0_40 = arith.constant 0 : index
    %51 = vector.load %arg3[%c4_38, %c0_39, %c0_40] : memref<5x128x128xbf16, #tpu.memory_space<vmem>>, vector<1x128x128xbf16>
    %52 = vector.shape_cast %51 : vector<1x128x128xbf16> to vector<128x128xbf16>
    %cst_41 = arith.constant dense<0.000000e+00> : vector<14x128xf32>
    %53 = tpu.matmul %50, %52, %cst_41 {dimension_numbers = #tpu.dot_dimension_numbers<[1], [0], [0], [1], [0, 0, 1, 1], [], []>} : vector<14x128xbf16>, vector<128x128xbf16>, vector<14x128xf32> -> vector<14x128xf32>
    %54 = arith.addf %46, %53 : vector<14x128xf32>
    %c1_42 = arith.constant 1 : index
    %c0_43 = arith.constant 0 : index
    %55 = vector.load %arg6[%c1_42, %c0_43] : memref<4x128xf32, #tpu.memory_space<vmem>>, vector<1x128xf32>
    %56 = vector.broadcast %55 : vector<1x128xf32> to vector<14x128xf32>
    %57 = arith.addf %54, %56 : vector<14x128xf32>
    %cst_44 = arith.constant 2.000000e-01 : f32
    %58 = vector.broadcast %cst_44 : f32 to vector<14x128xf32>
    %59 = arith.mulf %58, %57 : vector<14x128xf32>
    %60 = arith.maximumf %57, %59 : vector<14x128xf32>
    %61 = vector.extract_strided_slice %60 {offsets = [0, 0], sizes = [7, 128], strides = [1, 1]} : vector<14x128xf32> to vector<7x128xf32>
    %c32 = arith.constant 32 : index
    %c0_45 = arith.constant 0 : index
    %62 = vector.load %arg8[%c32, %c0_45] : memref<82x128xf32, #tpu.memory_space<vmem>>, vector<7x128xf32>
    tpu.vector_store %arg8[%c32, %c0_45], %61 {strides = array<i32>} : memref<82x128xf32, #tpu.memory_space<vmem>>, vector<7x128xf32>,
    %63 = vector.extract_strided_slice %60 {offsets = [7, 0], sizes = [7, 128], strides = [1, 1]} : vector<14x128xf32> to vector<7x128xf32>
    %c73 = arith.constant 73 : index
    %c0_46 = arith.constant 0 : index
    %64 = vector.load %arg8[%c73, %c0_46] : memref<82x128xf32, #tpu.memory_space<vmem>>, vector<7x128xf32>
    tpu.vector_store %arg8[%c73, %c0_46], %63 {strides = array<i32>} : memref<82x128xf32, #tpu.memory_space<vmem>>, vector<7x128xf32>,
    %cst_47 = arith.constant 0.000000e+00 : f32
    %65 = vector.broadcast %cst_47 : f32 to vector<4x128xf32>
    %c32_48 = arith.constant 32 : index
    %c0_49 = arith.constant 0 : index
    %66 = tpu.strided_load %arg8[%c32_48, %c0_49] {strides = array<i32: 2, 1>} : memref<82x128xf32, #tpu.memory_space<vmem>>, vector<2x128xf32>
    %c73_50 = arith.constant 73 : index
    %c0_51 = arith.constant 0 : index
    %67 = tpu.strided_load %arg8[%c73_50, %c0_51] {strides = array<i32: 2, 1>} : memref<82x128xf32, #tpu.memory_space<vmem>>, vector<2x128xf32>
    %68 = tpu.concatenate %66, %67 in 0 : vector<2x128xf32>, vector<2x128xf32> -> vector<4x128xf32>
    %69 = arith.truncf %68 : vector<4x128xf32> to vector<4x128xbf16>
    %c0_52 = arith.constant 0 : index
    %c0_53 = arith.constant 0 : index
    %c0_54 = arith.constant 0 : index
    %70 = vector.load %arg4[%c0_52, %c0_53, %c0_54] : memref<4x128x128xbf16, #tpu.memory_space<vmem>>, vector<1x128x128xbf16>
    %71 = vector.shape_cast %70 : vector<1x128x128xbf16> to vector<128x128xbf16>
    %cst_55 = arith.constant dense<0.000000e+00> : vector<4x128xf32>
    %72 = tpu.matmul %69, %71, %cst_55 {dimension_numbers = #tpu.dot_dimension_numbers<[1], [0], [0], [1], [0, 0, 1, 1], [], []>} : vector<4x128xbf16>, vector<128x128xbf16>, vector<4x128xf32> -> vector<4x128xf32>
    %73 = arith.addf %65, %72 : vector<4x128xf32>
    %c33 = arith.constant 33 : index
    %c0_56 = arith.constant 0 : index
    %74 = tpu.strided_load %arg8[%c33, %c0_56] {strides = array<i32: 2, 1>} : memref<82x128xf32, #tpu.memory_space<vmem>>, vector<2x128xf32>
    %c74 = arith.constant 74 : index
    %c0_57 = arith.constant 0 : index
    %75 = tpu.strided_load %arg8[%c74, %c0_57] {strides = array<i32: 2, 1>} : memref<82x128xf32, #tpu.memory_space<vmem>>, vector<2x128xf32>
    %76 = tpu.concatenate %74, %75 in 0 : vector<2x128xf32>, vector<2x128xf32> -> vector<4x128xf32>
    %77 = arith.truncf %76 : vector<4x128xf32> to vector<4x128xbf16>
    %c1_58 = arith.constant 1 : index
    %c0_59 = arith.constant 0 : index
    %c0_60 = arith.constant 0 : index
    %78 = vector.load %arg4[%c1_58, %c0_59, %c0_60] : memref<4x128x128xbf16, #tpu.memory_space<vmem>>, vector<1x128x128xbf16>
    %79 = vector.shape_cast %78 : vector<1x128x128xbf16> to vector<128x128xbf16>
    %cst_61 = arith.constant dense<0.000000e+00> : vector<4x128xf32>
    %80 = tpu.matmul %77, %79, %cst_61 {dimension_numbers = #tpu.dot_dimension_numbers<[1], [0], [0], [1], [0, 0, 1, 1], [], []>} : vector<4x128xbf16>, vector<128x128xbf16>, vector<4x128xf32> -> vector<4x128xf32>
    %81 = arith.addf %73, %80 : vector<4x128xf32>
    %c34 = arith.constant 34 : index
    %c0_62 = arith.constant 0 : index
    %82 = tpu.strided_load %arg8[%c34, %c0_62] {strides = array<i32: 2, 1>} : memref<82x128xf32, #tpu.memory_space<vmem>>, vector<2x128xf32>
    %c75 = arith.constant 75 : index
    %c0_63 = arith.constant 0 : index
    %83 = tpu.strided_load %arg8[%c75, %c0_63] {strides = array<i32: 2, 1>} : memref<82x128xf32, #tpu.memory_space<vmem>>, vector<2x128xf32>
    %84 = tpu.concatenate %82, %83 in 0 : vector<2x128xf32>, vector<2x128xf32> -> vector<4x128xf32>
    %85 = arith.truncf %84 : vector<4x128xf32> to vector<4x128xbf16>
    %c2_64 = arith.constant 2 : index
    %c0_65 = arith.constant 0 : index
    %c0_66 = arith.constant 0 : index
    %86 = vector.load %arg4[%c2_64, %c0_65, %c0_66] : memref<4x128x128xbf16, #tpu.memory_space<vmem>>, vector<1x128x128xbf16>
    %87 = vector.shape_cast %86 : vector<1x128x128xbf16> to vector<128x128xbf16>
    %cst_67 = arith.constant dense<0.000000e+00> : vector<4x128xf32>
    %88 = tpu.matmul %85, %87, %cst_67 {dimension_numbers = #tpu.dot_dimension_numbers<[1], [0], [0], [1], [0, 0, 1, 1], [], []>} : vector<4x128xbf16>, vector<128x128xbf16>, vector<4x128xf32> -> vector<4x128xf32>
    %89 = arith.addf %81, %88 : vector<4x128xf32>
    %c35 = arith.constant 35 : index
    %c0_68 = arith.constant 0 : index
    %90 = tpu.strided_load %arg8[%c35, %c0_68] {strides = array<i32: 2, 1>} : memref<82x128xf32, #tpu.memory_space<vmem>>, vector<2x128xf32>
    %c76 = arith.constant 76 : index
    %c0_69 = arith.constant 0 : index
    %91 = tpu.strided_load %arg8[%c76, %c0_69] {strides = array<i32: 2, 1>} : memref<82x128xf32, #tpu.memory_space<vmem>>, vector<2x128xf32>
    %92 = tpu.concatenate %90, %91 in 0 : vector<2x128xf32>, vector<2x128xf32> -> vector<4x128xf32>
    %93 = arith.truncf %92 : vector<4x128xf32> to vector<4x128xbf16>
    %c3_70 = arith.constant 3 : index
    %c0_71 = arith.constant 0 : index
    %c0_72 = arith.constant 0 : index
    %94 = vector.load %arg4[%c3_70, %c0_71, %c0_72] : memref<4x128x128xbf16, #tpu.memory_space<vmem>>, vector<1x128x128xbf16>
    %95 = vector.shape_cast %94 : vector<1x128x128xbf16> to vector<128x128xbf16>
    %cst_73 = arith.constant dense<0.000000e+00> : vector<4x128xf32>
    %96 = tpu.matmul %93, %95, %cst_73 {dimension_numbers = #tpu.dot_dimension_numbers<[1], [0], [0], [1], [0, 0, 1, 1], [], []>} : vector<4x128xbf16>, vector<128x128xbf16>, vector<4x128xf32> -> vector<4x128xf32>
    %97 = arith.addf %89, %96 : vector<4x128xf32>
    %c2_74 = arith.constant 2 : index
    %c0_75 = arith.constant 0 : index
    %98 = vector.load %arg6[%c2_74, %c0_75] : memref<4x128xf32, #tpu.memory_space<vmem>>, vector<1x128xf32>
    %99 = vector.broadcast %98 : vector<1x128xf32> to vector<4x128xf32>
    %100 = arith.addf %97, %99 : vector<4x128xf32>
    %cst_76 = arith.constant 2.000000e-01 : f32
    %101 = vector.broadcast %cst_76 : f32 to vector<4x128xf32>
    %102 = arith.mulf %101, %100 : vector<4x128xf32>
    %103 = arith.maximumf %100, %102 : vector<4x128xf32>
    %104 = vector.extract_strided_slice %103 {offsets = [0, 0], sizes = [2, 128], strides = [1, 1]} : vector<4x128xf32> to vector<2x128xf32>
    %c39 = arith.constant 39 : index
    %c0_77 = arith.constant 0 : index
    %105 = vector.load %arg8[%c39, %c0_77] : memref<82x128xf32, #tpu.memory_space<vmem>>, vector<2x128xf32>
    tpu.vector_store %arg8[%c39, %c0_77], %104 {strides = array<i32>} : memref<82x128xf32, #tpu.memory_space<vmem>>, vector<2x128xf32>,
    %106 = vector.extract_strided_slice %103 {offsets = [2, 0], sizes = [2, 128], strides = [1, 1]} : vector<4x128xf32> to vector<2x128xf32>
    %c80 = arith.constant 80 : index
    %c0_78 = arith.constant 0 : index
    %107 = vector.load %arg8[%c80, %c0_78] : memref<82x128xf32, #tpu.memory_space<vmem>>, vector<2x128xf32>
    tpu.vector_store %arg8[%c80, %c0_78], %106 {strides = array<i32>} : memref<82x128xf32, #tpu.memory_space<vmem>>, vector<2x128xf32>,
    %c0_79 = arith.constant 0 : index
    %c0_80 = arith.constant 0 : index
    %108 = vector.load %arg8[%c0_79, %c0_80] : memref<82x128xf32, #tpu.memory_space<vmem>>, vector<82x128xf32>
    %109 = arith.truncf %108 : vector<82x128xf32> to vector<82x128xbf16>
    %c0_81 = arith.constant 0 : index
    %c0_82 = arith.constant 0 : index
    %110 = vector.load %arg5[%c0_81, %c0_82] : memref<128x128xbf16, #tpu.memory_space<vmem>>, vector<128x128xbf16>
    %cst_83 = arith.constant dense<0.000000e+00> : vector<82x128xf32>
    %111 = tpu.matmul %109, %110, %cst_83 {dimension_numbers = #tpu.dot_dimension_numbers<[1], [0], [0], [1], [0, 0, 1, 1], [], []>} : vector<82x128xbf16>, vector<128x128xbf16>, vector<82x128xf32> -> vector<82x128xf32>
    %c3_84 = arith.constant 3 : index
    %c0_85 = arith.constant 0 : index
    %112 = vector.load %arg6[%c3_84, %c0_85] : memref<4x128xf32, #tpu.memory_space<vmem>>, vector<1x128xf32>
    %113 = vector.broadcast %112 : vector<1x128xf32> to vector<82x128xf32>
    %114 = arith.addf %111, %113 : vector<82x128xf32>
    %cst_86 = arith.constant 2.000000e-01 : f32
    %115 = vector.broadcast %cst_86 : f32 to vector<82x128xf32>
    %116 = arith.mulf %115, %114 : vector<82x128xf32>
    %117 = arith.maximumf %114, %116 : vector<82x128xf32>
    %c0_87 = arith.constant 0 : index
    %c0_88 = arith.constant 0 : index
    %118 = vector.load %arg7[%c0_87, %c0_88] : memref<82x128xf32, #tpu.memory_space<vmem>>, vector<82x128xf32>
    tpu.vector_store %arg7[%c0_87, %c0_88], %117 {strides = array<i32>} : memref<82x128xf32, #tpu.memory_space<vmem>>, vector<82x128xf32>,
    return
  }
  func.func @transform_0(%arg0: i32) -> (i32, i32) {
    %c0_i32 = arith.constant 0 : i32
    %c0_i32_0 = arith.constant 0 : i32
    return %arg0, %c0_i32 : i32, i32
  }
  func.func @transform_1(%arg0: i32) -> (i32, i32) {
    %c0_i32 = arith.constant 0 : i32
    %c0_i32_0 = arith.constant 0 : i32
    %c0_i32_1 = arith.constant 0 : i32
    return %c0_i32, %c0_i32_0 : i32, i32
  }
  func.func @transform_2(%arg0: i32) -> (i32, i32, i32) {
    %c0_i32 = arith.constant 0 : i32
    %c0_i32_0 = arith.constant 0 : i32
    %c0_i32_1 = arith.constant 0 : i32
    %c0_i32_2 = arith.constant 0 : i32
    return %c0_i32, %c0_i32_0, %c0_i32_1 : i32, i32, i32
  }
  func.func @transform_3(%arg0: i32) -> (i32, i32, i32) {
    %c0_i32 = arith.constant 0 : i32
    %c0_i32_0 = arith.constant 0 : i32
    %c0_i32_1 = arith.constant 0 : i32
    %c0_i32_2 = arith.constant 0 : i32
    return %c0_i32, %c0_i32_0, %c0_i32_1 : i32, i32, i32
  }
  func.func @transform_4(%arg0: i32) -> (i32, i32) {
    %c0_i32 = arith.constant 0 : i32
    %c0_i32_0 = arith.constant 0 : i32
    %c0_i32_1 = arith.constant 0 : i32
    return %c0_i32, %c0_i32_0 : i32, i32
  }
  func.func @transform_5(%arg0: i32) -> (i32, i32) {
    %c0_i32 = arith.constant 0 : i32
    %c0_i32_0 = arith.constant 0 : i32
    %c0_i32_1 = arith.constant 0 : i32
    return %c0_i32, %c0_i32_0 : i32, i32
  }
  func.func @transform_6(%arg0: i32) -> (i32, i32) {
    %c0_i32 = arith.constant 0 : i32
    %c0_i32_0 = arith.constant 0 : i32
    return %arg0, %c0_i32 : i32, i32
  }
}

</mosaic_0001>

<bundles_post_ra>
// kernel: octree_key_conv_forward.1
= control target key start
LH: loop header
LB: loop body
LE: loop exit
PB: predicated region body
PF: predicated region fallthrough
CT: control target
= control target key end

     0   :  { %11 = vsyncpa [#allocation4], 0  ;;  %s1774_s0 = inlined_call_operand.vmem [shape: f32[64,5], index: 0, kind: input, shape index: {}]   ;;  %s1775_s1 = inlined_call_operand.vmem [shape: bf16[5,128], index: 1, kind: input, shape index: {}]   ;;  %s1776_s2 = inlined_call_operand.hbm [shape: bf16[5,128,128], index: 2, kind: input, shape index: {}]   ;;  %s1777_s3 = inlined_call_operand.hbm [shape: bf16[4,128,128], index: 3, kind: input, shape index: {}]   ;;  %s1778_s4 = inlined_call_operand.vmem [shape: bf16[128,128], index: 4, kind: input, shape index: {}]   ;;  %s1779_s5 = inlined_call_operand.vmem [shape: f32[4,128], index: 5, kind: input, shape index: {}]   ;;  %s1780_s6 = inlined_call_operand.vmem [shape: f32[82,128], index: 6, kind: output, shape index: {}]  }
   0x1   :  { %s21_s23 = sshll.u32 %s1776_s2, 4  ;;  %s22_s23 = int_to_ptr.hbm [resolvable:$true] %s21_s23 }
   0x2   :  { %12 = vsyncpa [#allocation6], 0  ;;  %s1590_s24 = smov [#allocation3]   ;;  %s34_s28 = sshll.u32 %s1777_s3, 4  ;;  %s35_s28 = int_to_ptr.hbm [resolvable:$true] %s34_s28 }
   0x3   :  { %s23_s25 = sshll.u32 %s1590_s24, 4  ;;  %s1591_s29 = smov 64   ;;  %s24_s25 = int_to_ptr.vmem [resolvable:$true] %s23_s25 }
   0x4   :  { %s1592_s30 = smov 4   ;;  %s1593_s7 = smov [#allocation5]  }
   0x5   :  { %29 = dma.hbm_to_vmem [thread:$0]  %s22_s23, 5120, %s24_s25, [#allocation4], %s1591_s29, %s1591_s29, %s1592_s30  }
   0x6   :  { %s36_s8 = sshll.u32 %s1593_s7, 4  ;;  %s37_s8 = int_to_ptr.vmem [resolvable:$true] %s36_s8 }
   0x7   :  { %42 = dma.hbm_to_vmem [thread:$0]  %s35_s28, 4096, %s37_s8, [#allocation6], %s1591_s29, %s1591_s29, %s1592_s30  }
   0x8   :  { %1586 = dma.done.wait [#allocation4], 5120  }
   0x9   :  { %1587 = vsyncadd [#allocation4], 4294962176 }
   0xa   :  { %1588 = dma.done.wait [#allocation6], 4096  }
   0xb   :  { %1589 = vsyncadd [#allocation6], 4294963200  ;;  %vm84_vm0 = vcmask 1041408   ;;  %vm85_vm1 = vcmask 1042432   ;;  %v1594_v0 = vmov 65535   ;;  %v56_v4 = vld [vmem:[%s1774_s0] sm:$0xff] }
   0xc   :  { %v86_v1 = vsel %vm84_vm0, 4294967295, %v1594_v0  ;;  %v68_v3 = vld [vmem:[%s1775_s1] sm:$0x7]  ;;  %v57_v5 = vld [vmem:[%s1774_s0 + $0x8] sm:$0xff]  ;;  %vm71_vm2 = vcmask 39936   ;;  %v58_v11 = vld [vmem:[%s1774_s0 + $0x10] sm:$0xff] }
   0xd   :  { %v87_v2 = vsel %vm85_vm1, %v86_v1, 0  ;;  %v60_v7 = vld [vmem:[%s1774_s0 + $0x20] sm:$0xff]  ;;  %v61_v8 = vld [vmem:[%s1774_s0 + $0x28] sm:$0xff]  ;;  %v64_v9 = vpack.c.bf16 %v57_v5, %v56_v4  ;;  %v59_v12 = vld [vmem:[%s1774_s0 + $0x18] sm:$0xff]  ;;  %vm150_vm3 = vcmask 1046528  }
   0xe   :  { %v89_v6 = vand.u32 %v87_v2, %v68_v3  ;;  %v66_v10 = vpack.c.bf16 %v61_v8, %v60_v7  ;;  %v62_v13 = vld [vmem:[%s1774_s0 + $0x30] sm:$0xff]  ;;  %v63_v14 = vld [vmem:[%s1774_s0 + $0x38] sm:$0xff]  ;;  %v65_v15 = vpack.c.bf16 %v59_v12, %v58_v11  ;;  %v1454_v19 = vld [vmem:[#allocation3 + $0x70] sm:$0xff] }
   0xf   :  { %v67_v16 = vpack.c.bf16 %v63_v14, %v62_v13  ;;  %v1455_v17 = vld [vmem:[#allocation3 + $0x78] sm:$0xff]  ;;  %v1446_v20 = vld [vmem:[#allocation3 + $0x30] sm:$0xff]  ;;  %v1453_v21 = vld [vmem:[#allocation3 + $0x68] sm:$0xff] }
  0x10   :  { %98 = vmatpush.bf16.msra.mxu0 %v89_v6  ;;  %1520 = vmatpush.bf16.msra.mxu1 %v89_v6  ;;  %v1447_v18 = vld [vmem:[#allocation3 + $0x38] sm:$0xff]  ;;  %v1445_v22 = vld [vmem:[#allocation3 + $0x28] sm:$0xff]  ;;  %v1452_v23 = vld [vmem:[#allocation3 + $0x60] sm:$0xff] }
  0x11   :  { %305 = vmatpush.bf16.msra.mxu2 %v1447_v18  ;;  %v1444_v24 = vld [vmem:[#allocation3 + $0x20] sm:$0xff]  ;;  %v1463_v25 = vld [vmem:[#allocation3 + $0xb8] sm:$0xff]  ;;  %v1462_v28 = vld [vmem:[#allocation3 + $0xb0] sm:$0xff] }
  0x12   :  { %393 = vmatpush.bf16.msra.mxu3 %v1463_v25  ;;  %v1451_v26 = vld [vmem:[#allocation3 + $0x58] sm:$0xff]  ;;  %v1450_v29 = vld [vmem:[#allocation3 + $0x50] sm:$0xff]  ;;  %v1461_v31 = vld [vmem:[#allocation3 + $0xa8] sm:$0xff] }
  0x13   :  { %1116 = vmatmul.msk.bf16.vlgmr.msra.gmra.mxu0 %vm71_vm2, %v64_v9  ;;  %1118 = vmatmul.msk.bf16.vlgmr.msra.gmra.mxu1 %vm71_vm2, %v66_v10  ;;  %v1443_v27 = vld [vmem:[#allocation3 + $0x18] sm:$0xff]  ;;  %v1442_v30 = vld [vmem:[#allocation3 + $0x10] sm:$0xff]  ;;  %v1449_v32 = vld [vmem:[#allocation3 + $0x48] sm:$0xff] }
  0x14   :  { %243 = vmatpush.bf16.msrb.mxu1 %v1455_v17  ;;  %v1441_v33 = vld [vmem:[#allocation3 + $0x8] sm:$0xff]  ;;  %v1460_v34 = vld [vmem:[#allocation3 + $0xa0] sm:$0xff]  ;;  %v1459_v37 = vld [vmem:[#allocation3 + $0x98] sm:$0xff] }
  0x15   :  { %306 = vmatpush.bf16.msra.mxu2 %v1446_v20  ;;  %v1448_v35 = vld [vmem:[#allocation3 + $0x40] sm:$0xff]  ;;  %v1471_v38 = vld [vmem:[#allocation3 + $0xf8] sm:$0xff]  ;;  %v1667_v40 = vld [vmem:[%s1779_s5] ss:$0 sm:$0xff] }
  0x16   :  { %394 = vmatpush.bf16.msra.mxu3 %v1462_v28  ;;  %v1440_v36 = vld [vmem:[#allocation3] sm:$0xff]  ;;  %v1479_v39 = vld [vmem:[#allocation3 + $0x138] sm:$0xff]  ;;  %v1458_v43 = vld [vmem:[#allocation3 + $0x90] sm:$0xff] }
  0x17   :  { %v1470_v44 = vld [vmem:[#allocation3 + $0xf0] sm:$0xff]  ;;  %v1457_v48 = vld [vmem:[#allocation3 + $0x88] sm:$0xff]  ;;  %v1456_v55 = vld [vmem:[#allocation3 + $0x80] sm:$0xff] }
  0x18   :  { %244 = vmatpush.bf16.msrb.mxu1 %v1454_v19  ;;  %v1478_v45 = vld [vmem:[#allocation3 + $0x130] sm:$0xff]  ;;  %v1469_v49 = vld [vmem:[#allocation3 + $0xe8] sm:$0xff]  ;;  %v1468_v56 = vld [vmem:[#allocation3 + $0xe0] sm:$0xff] }
  0x19   :  { %307 = vmatpush.bf16.msra.mxu2 %v1445_v22  ;;  %v1477_v52 = vld [vmem:[#allocation3 + $0x128] sm:$0xff]  ;;  %v1476_v57 = vld [vmem:[#allocation3 + $0x120] sm:$0xff]  ;;  %v1467_v2 = vld [vmem:[#allocation3 + $0xd8] sm:$0xff] }
  0x1a   :  { %395 = vmatpush.bf16.msra.mxu3 %v1461_v31  ;;  %v1475_v3 = vld [vmem:[#allocation3 + $0x118] sm:$0xff]  ;;  %v1466_v7 = vld [vmem:[#allocation3 + $0xd0] sm:$0xff]  ;;  %v1465_v13 = vld [vmem:[#allocation3 + $0xc8] sm:$0xff] }
  0x1b   :  { %v1474_v8 = vld [vmem:[#allocation3 + $0x110] sm:$0xff]  ;;  %v1473_v14 = vld [vmem:[#allocation3 + $0x108] sm:$0xff]  ;;  %v1464_v19 = vld [vmem:[#allocation3 + $0xc0] sm:$0xff] }
  0x1c   :  { %245 = vmatpush.bf16.msrb.mxu1 %v1453_v21  ;;  %v1472_v20 = vld [vmem:[#allocation3 + $0x100] sm:$0xff] }
  0x1d   :  { %308 = vmatpush.bf16.msra.mxu2 %v1444_v24 }
  0x1e   :  { %396 = vmatpush.bf16.msra.mxu3 %v1460_v34 }
  0x20   :  { %246 = vmatpush.bf16.msrb.mxu1 %v1452_v23 }
  0x21   :  { %309 = vmatpush.bf16.msra.mxu2 %v1443_v27 }
  0x22   :  { %397 = vmatpush.bf16.msra.mxu3 %v1459_v37 }
  0x23   :  { %1117 = vmatmul.msk.bf16.gmra.mxu0 %vm71_vm2, %v65_v15  ;;  %1119 = vmatmul.msk.bf16.gmra.mxu1 %vm71_vm2, %v67_v16 }
  0x24   :  { %247 = vmatpush.bf16.msrb.mxu1 %v1451_v26 }
  0x25   :  { %310 = vmatpush.bf16.msra.mxu2 %v1442_v30 }
  0x26   :  { %398 = vmatpush.bf16.msra.mxu3 %v1458_v43 }
  0x28   :  { %248 = vmatpush.bf16.msrb.mxu1 %v1450_v29 }
  0x29   :  { %311 = vmatpush.bf16.msra.mxu2 %v1441_v33 }
  0x2a   :  { %399 = vmatpush.bf16.msra.mxu3 %v1457_v48 }
  0x2c   :  { %249 = vmatpush.bf16.msrb.mxu1 %v1449_v32 }
  0x2d   :  { %312 = vmatpush.bf16.msra.mxu2 %v1440_v36 }
  0x2e   :  { %400 = vmatpush.bf16.msra.mxu3 %v1456_v55  ;;  %v1487_v55 = vld [vmem:[#allocation5 + $0x38] sm:$0xff] }
  0x2f   :  { %760 = vmatpush.bf16.msrb.mxu0 %v1487_v55 }
  0x30   :  { %250 = vmatpush.bf16.msrb.mxu1 %v1448_v35 }
  0x31   :  { %573 = vmatpush.bf16.msrb.mxu2 %v1479_v39 }
  0x34   :  { %483 = vmatpush.bf16.msra.mxu1 %v1471_v38 }
  0x35   :  { %574 = vmatpush.bf16.msrb.mxu2 %v1478_v45 }
  0x38   :  { %484 = vmatpush.bf16.msra.mxu1 %v1470_v44 }
  0x39   :  { %575 = vmatpush.bf16.msrb.mxu2 %v1477_v52 }
  0x3c   :  { %485 = vmatpush.bf16.msra.mxu1 %v1469_v49 }
  0x3d   :  { %576 = vmatpush.bf16.msrb.mxu2 %v1476_v57  ;;  %v1486_v57 = vld [vmem:[#allocation5 + $0x30] sm:$0xff] }
  0x3e   :  { %761 = vmatpush.bf16.msrb.mxu0 %v1486_v57 }
  0x40   :  { %486 = vmatpush.bf16.msra.mxu1 %v1468_v56  ;;  %v1494_v56 = vld [vmem:[#allocation5 + $0x70] sm:$0xff] }
  0x41   :  { %577 = vmatpush.bf16.msrb.mxu2 %v1475_v3  ;;  %v1502_v3 = vld [vmem:[#allocation5 + $0xb0] sm:$0xff] }
  0x44   :  { %487 = vmatpush.bf16.msra.mxu1 %v1467_v2  ;;  %v1483_v2 = vld [vmem:[#allocation5 + $0x18] sm:$0xff] }
  0x45   :  { %578 = vmatpush.bf16.msrb.mxu2 %v1474_v8 }
  0x48   :  { %488 = vmatpush.bf16.msra.mxu1 %v1466_v7  ;;  %v1482_v7 = vld [vmem:[#allocation5 + $0x10] sm:$0xff] }
  0x49   :  { %579 = vmatpush.bf16.msrb.mxu2 %v1473_v14  ;;  %v1508_v14 = vld [vmem:[#allocation5 + $0xe0] sm:$0xff] }
  0x4c   :  { %489 = vmatpush.bf16.msra.mxu1 %v1465_v13  ;;  %v1500_v13 = vld [vmem:[#allocation5 + $0xa0] sm:$0xff] }
  0x4d   :  { %580 = vmatpush.bf16.msrb.mxu2 %v1472_v20 }
  0x50   :  { %490 = vmatpush.bf16.msra.mxu1 %v1464_v19  ;;  %v1499_v19 = vld [vmem:[#allocation5 + $0x98] sm:$0xff] }
  0x90   :  { %v100_v41 = vpop.f32.mrf.mxu0  ;;  %v110_v42 = vpop.f32.mrf.mxu1 }
  0x91   :  { %v101_v46 = vadd.f32 %v1667_v40, %v100_v41  ;;  %v111_v47 = vadd.f32 %v1667_v40, %v110_v42 }
  0x93   :  { %v120_v50 = vmul.f32 0.2, %v101_v46  ;;  %v124_v51 = vmul.f32 0.2, %v111_v47 }
  0x95   :  { %v1671_v53 = vmax.f32 %v101_v46, %v120_v50  ;;  %v132_v54 = vmax.f32 %v111_v47, %v124_v51 }
  0x97   :  { %136 = vst [vmem:[#allocation2] sm:$0xff] %v1671_v53 }
  0x98   :  { %140 = vst [vmem:[#allocation2 + $0x29] sm:$0xff] %v132_v54  ;;  %v102_v58 = vpop.f32.mrf.mxu0  ;;  %v112_v59 = vpop.f32.mrf.mxu1  ;;  %v1495_v54 = vld [vmem:[#allocation5 + $0x78] sm:$0xff] }
  0x99   :  { %v103_v60 = vadd.f32 %v1667_v40, %v102_v58  ;;  %v113_v61 = vadd.f32 %v1667_v40, %v112_v59  ;;  %699 = vmatpush.bf16.msrb.mxu3 %v1495_v54  ;;  %v1493_v58 = vld [vmem:[#allocation5 + $0x68] sm:$0xff] }
  0x9a   :  { %v1485_v59 = vld [vmem:[#allocation5 + $0x28] sm:$0xff] }
  0x9b   :  { %v121_v62 = vmul.f32 0.2, %v103_v60  ;;  %v125_v63 = vmul.f32 0.2, %v113_v61  ;;  %762 = vmatpush.bf16.msrb.mxu0 %v1485_v59  ;;  %v1512_v59 = vld [vmem:[%s1778_s4] sm:$0xff] }
  0x9d   :  { %v1676_v0 = vmax.f32 %v103_v60, %v121_v62  ;;  %v133_v1 = vmax.f32 %v113_v61, %v125_v63  ;;  %700 = vmatpush.bf16.msrb.mxu3 %v1494_v56  ;;  %v1503_v60 = vld [vmem:[#allocation5 + $0xb8] sm:$0xff]  ;;  %v1492_v62 = vld [vmem:[#allocation5 + $0x60] sm:$0xff]  ;;  %v1513_v56 = vld [vmem:[%s1778_s4 + $0x8] sm:$0xff] }
  0x9e   :  { %v1511_v61 = vld [vmem:[#allocation5 + $0xf8] sm:$0xff]  ;;  %v1484_v63 = vld [vmem:[#allocation5 + $0x20] sm:$0xff] }
  0x9f   :  { %137 = vst [vmem:[#allocation2 + $0x8] sm:$0xff] %v1676_v0  ;;  %v967_v4 = vpack.c.bf16 %v1676_v0, %v1671_v53  ;;  %763 = vmatpush.bf16.msrb.mxu0 %v1484_v63  ;;  %v1536_v53 = vld [vmem:[%s1779_s5 + $0x2] ss:$0 sm:$0xff] }
  0xa0   :  { %141 = vst [vmem:[#allocation2 + $0x31] sm:$0xff] %v133_v1  ;;  %v105_v5 = vpop.f32.mrf.mxu0  ;;  %v115_v6 = vpop.f32.mrf.mxu1  ;;  %v1491_v1 = vld [vmem:[#allocation5 + $0x58] sm:$0xff] }
  0xa1   :  { %v106_v9 = vadd.f32 %v1667_v40, %v105_v5  ;;  %v116_v10 = vadd.f32 %v1667_v40, %v115_v6  ;;  %701 = vmatpush.bf16.msrb.mxu3 %v1493_v58  ;;  %v1510_v5 = vld [vmem:[#allocation5 + $0xf0] sm:$0xff] }
  0xa2   :  { %v1490_v6 = vld [vmem:[#allocation5 + $0x50] sm:$0xff] }
  0xa3   :  { %v122_v11 = vmul.f32 0.2, %v106_v9  ;;  %v126_v12 = vmul.f32 0.2, %v116_v10  ;;  %764 = vmatpush.bf16.msrb.mxu0 %v1483_v2 }
  0xa5   :  { %v1683_v15 = vmax.f32 %v106_v9, %v122_v11  ;;  %v134_v16 = vmax.f32 %v116_v10, %v126_v12  ;;  %702 = vmatpush.bf16.msrb.mxu3 %v1492_v62  ;;  %v1501_v9 = vld [vmem:[#allocation5 + $0xa8] sm:$0xff] }
  0xa6   :  { %v1509_v10 = vld [vmem:[#allocation5 + $0xe8] sm:$0xff] }
  0xa7   :  { %138 = vst [vmem:[#allocation2 + $0x10] sm:$0xff] %v1683_v15  ;;  %765 = vmatpush.bf16.msrb.mxu0 %v1482_v7  ;;  %v1489_v11 = vld [vmem:[#allocation5 + $0x48] sm:$0xff] }
  0xa8   :  { %142 = vst [vmem:[#allocation2 + $0x39] sm:$0xff] %v134_v16  ;;  %v107_v17 = vpop.f32.mrf.mxu0  ;;  %v117_v18 = vpop.f32.mrf.mxu1  ;;  %v1481_v12 = vld [vmem:[#allocation5 + $0x8] sm:$0xff] }
  0xa9   :  { %v108_v21 = vadd.f32 %v1667_v40, %v107_v17  ;;  %v118_v22 = vadd.f32 %v1667_v40, %v117_v18  ;;  %703 = vmatpush.bf16.msrb.mxu3 %v1491_v1  ;;  %v1488_v17 = vld [vmem:[#allocation5 + $0x40] sm:$0xff] }
  0xaa   :  { %v1480_v18 = vld [vmem:[#allocation5] sm:$0xff] }
  0xab   :  { %v123_v23 = vmul.f32 0.2, %v108_v21  ;;  %v127_v24 = vmul.f32 0.2, %v118_v22  ;;  %766 = vmatpush.bf16.msrb.mxu0 %v1481_v12 }
  0xad   :  { %v1688_v25 = vmax.f32 %v108_v21, %v123_v23  ;;  %v135_v26 = vmax.f32 %v118_v22, %v127_v24  ;;  %704 = vmatpush.bf16.msrb.mxu3 %v1490_v6  ;;  %v1507_v21 = vld [vmem:[#allocation5 + $0xd8] sm:$0xff]  ;;  %v1519_v22 = vld [vmem:[%s1778_s4 + $0x38] sm:$0xff]  ;;  %v1498_v23 = vld [vmem:[#allocation5 + $0x90] sm:$0xff] }
  0xae   :  { %v1506_v24 = vld [vmem:[#allocation5 + $0xd0] sm:$0xff] }
  0xaf   :  { %139 = vst [vmem:[#allocation2 + $0x18] sm:$0xff] %v1688_v25  ;;  %v968_v27 = vpack.c.bf16 %v1688_v25, %v1683_v15  ;;  %767 = vmatpush.bf16.msrb.mxu0 %v1480_v18  ;;  %v1537_v15 = vld [vmem:[%s1779_s5 + $0x3] ss:$0 sm:$0xff] }
  0xb0   :  { %143 = vst [vmem:[#allocation2 + $0x41] sm:$0xff] %v135_v26  ;;  %v1518_v26 = vld [vmem:[%s1778_s4 + $0x30] sm:$0xff] }
  0xb1   :  { %705 = vmatpush.bf16.msrb.mxu3 %v1489_v11 }
  0xb3   :  { %1039 = vmatpush.bf16.msra.mxu0 %v1519_v22 }
  0xb5   :  { %706 = vmatpush.bf16.msrb.mxu3 %v1488_v17 }
  0xb6   :  { %v170_v30 = vld [vmem:[#allocation2 + $0x1] ss:$4 sm:$0x7f]  ;;  %v144_v33 = vld [vmem:[#allocation2] ss:$4 sm:$0x7f] }
  0xb7   :  { %v172_v28 = vld [vmem:[#allocation2 + $0x2a] ss:$4 sm:$0x7f]  ;;  %v146_v29 = vld [vmem:[#allocation2 + $0x29] ss:$4 sm:$0x7f]  ;;  %1040 = vmatpush.bf16.msra.mxu0 %v1518_v26 }
  0xb8   :  { %v174_v31 = vrot.slane %v172_v28, 1  ;;  %v148_v32 = vrot.slane %v146_v29, 1  ;;  %v322_v34 = vld [vmem:[#allocation2 + $0x2b] ss:$4 sm:$0x7f] }
  0xb9   :  { %v324_v37 = vrot.slane %v322_v34, 1  ;;  %v320_v40 = vld [vmem:[#allocation2 + $0x2] ss:$4 sm:$0x7f] }
  0xba   :  { %v176_v35 = vsel %vm150_vm3, %v170_v30, %v174_v31  ;;  %v151_v36 = vsel %vm150_vm3, %v144_v33, %v148_v32  ;;  %v412_v43 = vld [vmem:[#allocation2 + $0x2c] ss:$4 sm:$0x7f]  ;;  %v502_v44 = vld [vmem:[#allocation2 + $0x2d] ss:$4 sm:$0x7f] }
  0xbb   :  { %v177_v38 = vpack.c.bf16 %v174_v31, %v176_v35  ;;  %v152_v39 = vpack.c.bf16 %v148_v32, %v151_v36  ;;  %v326_v41 = vsel %vm150_vm3, %v320_v40, %v324_v37  ;;  %v414_v45 = vrot.slane %v412_v43, 1  ;;  %v410_v47 = vld [vmem:[#allocation2 + $0x3] ss:$4 sm:$0x7f]  ;;  %v1535_v40 = vld [vmem:[%s1779_s5 + $0x1] ss:$0 sm:$0xff] }
  0xbc   :  { %v327_v42 = vpack.c.bf16 %v324_v37, %v326_v41  ;;  %v504_v46 = vrot.slane %v502_v44, 1  ;;  %v500_v48 = vld [vmem:[#allocation2 + $0x4] ss:$4 sm:$0x7f] }
  0xbd   :  { %251 = vmatmul.bf16.vlgmr.msrb.gmra.mxu1 %v177_v38  ;;  %313 = vmatmul.bf16.vlgmr.msra.gmra.mxu2 %v152_v39  ;;  %v416_v49 = vsel %vm150_vm3, %v410_v47, %v414_v45  ;;  %v1497_v29 = vld [vmem:[#allocation5 + $0x88] sm:$0xff]  ;;  %v1517_v32 = vld [vmem:[%s1778_s4 + $0x28] sm:$0xff]  ;;  %v1496_v35 = vld [vmem:[#allocation5 + $0x80] sm:$0xff] }
  0xbe   :  { %401 = vmatmul.bf16.vlgmr.msra.gmra.mxu3 %v327_v42  ;;  %v506_v50 = vsel %vm150_vm3, %v500_v48, %v504_v46  ;;  %v417_v51 = vpack.c.bf16 %v414_v45, %v416_v49  ;;  %847 = vmatpush.bf16.msrb.mxu1 %v1503_v60  ;;  %v1505_v30 = vld [vmem:[#allocation5 + $0xc8] sm:$0xff]  ;;  %v1504_v36 = vld [vmem:[#allocation5 + $0xc0] sm:$0xff] }
  0xbf   :  { %v507_v52 = vpack.c.bf16 %v504_v46, %v506_v50  ;;  %935 = vmatpush.bf16.msra.mxu2 %v1511_v61  ;;  %1521 = vmatpush.bf16.msra.mxu3 %v1519_v22  ;;  %v1516_v38 = vld [vmem:[%s1778_s4 + $0x20] sm:$0xff]  ;;  %v1515_v44 = vld [vmem:[%s1778_s4 + $0x18] sm:$0xff]  ;;  %v1514_v50 = vld [vmem:[%s1778_s4 + $0x10] sm:$0xff] }
  0xc0   :  { %1041 = vmatpush.bf16.msra.mxu0 %v1517_v32 }
  0xc2   :  { %848 = vmatpush.bf16.msrb.mxu1 %v1502_v3 }
  0xc3   :  { %936 = vmatpush.bf16.msra.mxu2 %v1510_v5  ;;  %1522 = vmatpush.bf16.msra.mxu3 %v1518_v26 }
  0xc4   :  { %1042 = vmatpush.bf16.msra.mxu0 %v1516_v38 }
  0xc6   :  { %849 = vmatpush.bf16.msrb.mxu1 %v1501_v9 }
  0xc7   :  { %937 = vmatpush.bf16.msra.mxu2 %v1509_v10  ;;  %1523 = vmatpush.bf16.msra.mxu3 %v1517_v32 }
  0xc8   :  { %1043 = vmatpush.bf16.msra.mxu0 %v1515_v44 }
  0xca   :  { %850 = vmatpush.bf16.msrb.mxu1 %v1500_v13 }
  0xcb   :  { %938 = vmatpush.bf16.msra.mxu2 %v1508_v14  ;;  %1524 = vmatpush.bf16.msra.mxu3 %v1516_v38 }
  0xcc   :  { %1044 = vmatpush.bf16.msra.mxu0 %v1514_v50 }
  0xcd   :  { %491 = vmatmul.bf16.vlgmr.msra.gmra.mxu1 %v417_v51  ;;  %581 = vmatmul.bf16.vlgmr.msrb.gmra.mxu2 %v507_v52 }
  0xce   :  { %851 = vmatpush.bf16.msrb.mxu1 %v1499_v19 }
  0xcf   :  { %939 = vmatpush.bf16.msra.mxu2 %v1507_v21  ;;  %1525 = vmatpush.bf16.msra.mxu3 %v1515_v44  ;;  %v962_v21 = vld [vmem:[#allocation2 + $0x30] sm:$0xff] }
  0xd0   :  { %1045 = vmatpush.bf16.msra.mxu0 %v1513_v56 }
  0xd2   :  { %852 = vmatpush.bf16.msrb.mxu1 %v1498_v23 }
  0xd3   :  { %940 = vmatpush.bf16.msra.mxu2 %v1506_v24  ;;  %1526 = vmatpush.bf16.msra.mxu3 %v1514_v50  ;;  %v964_v24 = vld [vmem:[#allocation2 + $0x40] sm:$0xff] }
  0xd4   :  { %1046 = vmatpush.bf16.msra.mxu0 %v1512_v59 }
  0xd6   :  { %853 = vmatpush.bf16.msrb.mxu1 %v1497_v29 }
  0xd7   :  { %941 = vmatpush.bf16.msra.mxu2 %v1505_v30  ;;  %1527 = vmatpush.bf16.msra.mxu3 %v1513_v56 }
  0xda   :  { %854 = vmatpush.bf16.msrb.mxu1 %v1496_v35 }
  0xdb   :  { %942 = vmatpush.bf16.msra.mxu2 %v1504_v36  ;;  %1528 = vmatpush.bf16.msra.mxu3 %v1512_v59 }
 0x13a   :  { %v252_v8 = vpop.f32.mrf.mxu1 }
 0x140   :  { %v314_v16 = vpop.f32.mrf.mxu2 }
 0x141   :  { %v315_v31 = vadd.f32 %v314_v16, %v252_v8  ;;  %v402_v33 = vpop.f32.mrf.mxu3 }
 0x142   :  { %v254_v20 = vpop.f32.mrf.mxu1 }
 0x143   :  { %v407_v37 = vadd.f32 %v402_v33, %v315_v31 }
 0x148   :  { %v316_v28 = vpop.f32.mrf.mxu2 }
 0x149   :  { %v317_v42 = vadd.f32 %v316_v28, %v254_v20  ;;  %v404_v46 = vpop.f32.mrf.mxu3  ;;  %v963_v20 = vld [vmem:[#allocation2 + $0x38] sm:$0xff] }
 0x14a   :  { %v492_v34 = vpop.f32.mrf.mxu1  ;;  %v970_v22 = vpack.c.bf16 %v963_v20, %v962_v21 }
 0x14b   :  { %v497_v39 = vadd.f32 %v492_v34, %v407_v37  ;;  %v408_v48 = vadd.f32 %v404_v46, %v317_v42 }
 0x150   :  { %v582_v41 = vpop.f32.mrf.mxu2 }
 0x151   :  { %v587_v43 = vadd.f32 %v582_v41, %v497_v39 }
 0x152   :  { %v494_v47 = vpop.f32.mrf.mxu1 }
 0x153   :  { %v591_v45 = vadd.f32 %v1535_v40, %v587_v43  ;;  %v498_v52 = vadd.f32 %v494_v47, %v408_v48 }
 0x155   :  { %v593_v49 = vmul.f32 0.2, %v591_v45 }
 0x157   :  { %v595_v51 = vmax.f32 %v591_v45, %v593_v49 }
 0x158   :  { %v584_v54 = vpop.f32.mrf.mxu2 }
 0x159   :  { %597 = vst [vmem:[#allocation2 + $0x20] sm:$0x7f] %v595_v51  ;;  %v588_v55 = vadd.f32 %v584_v54, %v498_v52 }
 0x15a   :  { %598 = vst [vmem:[#allocation2 + $0x42] sm:$0x80] %v595_v51 }
 0x15b   :  { %v592_v57 = vadd.f32 %v1535_v40, %v588_v55 }
 0x15d   :  { %v594_v58 = vmul.f32 0.2, %v592_v57 }
 0x15f   :  { %v596_v60 = vmax.f32 %v592_v57, %v594_v58 }
 0x160   :  { %v626_v61 = vld [vmem:[#allocation2 + $0x21] ss:$2 sm:$0x3]  ;;  %v601_v63 = vld [vmem:[#allocation2 + $0x20] ss:$2 sm:$0x3] }
 0x161   :  { %599 = vst [vmem:[#allocation2 + $0x4a] sm:$0x3f] %v596_v60  ;;  %v774_v10 = vld [vmem:[#allocation2 + $0x22] ss:$2 sm:$0x3] }
 0x162   :  { %v862_v16 = vld [vmem:[#allocation2 + $0x23] ss:$2 sm:$0x3] }
 0x168   :  { %v628_v62 = vld [vmem:[#allocation2 + $0x4a] ss:$2 sm:$0x3]  ;;  %v603_v1 = vld [vmem:[#allocation2 + $0x49] ss:$2 sm:$0x3] }
 0x169   :  { %v630_v2 = vrot.slane %v628_v62, 6  ;;  %v605_v3 = vrot.slane %v603_v1, 6  ;;  %v776_v5 = vld [vmem:[#allocation2 + $0x4b] ss:$2 sm:$0x3] }
 0x16a   :  { %v778_v6 = vrot.slane %v776_v5, 6  ;;  %v864_v7 = vld [vmem:[#allocation2 + $0x4c] ss:$2 sm:$0x3] }
 0x16b   :  { %v632_v8 = vsel %vm84_vm0, %v626_v61, %v630_v2  ;;  %v607_v9 = vsel %vm84_vm0, %v601_v63, %v605_v3  ;;  %v866_v11 = vrot.slane %v864_v7, 6  ;;  %v965_v23 = vld [vmem:[#allocation2 + $0x48] sm:$0xff] }
 0x16c   :  { %v633_v12 = vpack.c.bf16 %v632_v8, %v632_v8  ;;  %v608_v13 = vpack.c.bf16 %v607_v9, %v607_v9  ;;  %v780_v14 = vsel %vm84_vm0, %v774_v10, %v778_v6  ;;  %v971_v26 = vpack.c.bf16 %v965_v23, %v964_v24 }
 0x16d   :  { %v781_v17 = vpack.c.bf16 %v780_v14, %v780_v14  ;;  %v868_v18 = vsel %vm84_vm0, %v862_v16, %v866_v11 }
 0x16e   :  { %707 = vmatmul.bf16.vlgmr.msrb.gmra.mxu3 %v633_v12  ;;  %768 = vmatmul.bf16.vlgmr.msrb.gmra.mxu0 %v608_v13  ;;  %v869_v19 = vpack.c.bf16 %v868_v18, %v868_v18 }
 0x16f   :  { %855 = vmatmul.bf16.vlgmr.msrb.gmra.mxu1 %v781_v17 }
 0x170   :  { %943 = vmatmul.bf16.vlgmr.msra.gmra.mxu2 %v869_v19 }
 0x17e   :  { %1047 = vmatmul.bf16.vlgmr.msra.gmra.mxu0 %v967_v4  ;;  %1062 = vmatmul.bf16.vlgmr.msra.gmra.mxu3 %v970_v22 }
 0x18e   :  { %1052 = vmatmul.bf16.gmra.mxu0 %v968_v27  ;;  %1067 = vmatmul.bf16.gmra.mxu3 %v971_v26 }
 0x1eb   :  { %v769_v28 = vpop.f32.mrf.mxu0 }
 0x1ec   :  { %v856_v29 = vpop.f32.mrf.mxu1 }
 0x1f1   :  { %v708_v30 = vpop.f32.mrf.mxu3 }
 0x1f2   :  { %v770_v31 = vadd.f32 %v769_v28, %v708_v30 }
 0x1f3   :  { %v944_v32 = vpop.f32.mrf.mxu2  ;;  %v771_v33 = vpop.f32.mrf.mxu0 }
 0x1f4   :  { %v860_v34 = vadd.f32 %v856_v29, %v770_v31  ;;  %v858_v0 = vpop.f32.mrf.mxu1 }
 0x1f6   :  { %v948_v4 = vadd.f32 %v944_v32, %v860_v34 }
 0x1f8   :  { %v951_v35 = vadd.f32 %v1536_v53, %v948_v4 }
 0x1f9   :  { %v710_v25 = vpop.f32.mrf.mxu3 }
 0x1fa   :  { %v952_v27 = vmul.f32 0.2, %v951_v35 }
 0x1fb   :  { %v946_v36 = vpop.f32.mrf.mxu2  ;;  %v1048_v37 = vpop.f32.mrf.mxu0 }
 0x1fc   :  { %v953_v38 = vmax.f32 %v951_v35, %v952_v27  ;;  %v1049_v39 = vadd.f32 %v1537_v15, %v1048_v37 }
 0x1fe   :  { %954 = vst [vmem:[#allocation2 + $0x27] sm:$0x3] %v953_v38  ;;  %v1077_v40 = vmul.f32 0.2, %v1049_v39 }
 0x1ff   :  { %955 = vst [vmem:[#allocation2 + $0x4e] sm:$0xc] %v953_v38 }
 0x200   :  { %v1088_v41 = vmax.f32 %v1049_v39, %v1077_v40 }
 0x201   :  { %v1063_v42 = vpop.f32.mrf.mxu3 }
 0x202   :  { %1099 = vst [vmem:[%s1780_s6] sm:$0xff] %v1088_v41  ;;  %v1064_v43 = vadd.f32 %v1537_v15, %v1063_v42 }
 0x203   :  { %v1050_v44 = vpop.f32.mrf.mxu0 }
 0x204   :  { %v1083_v45 = vmul.f32 0.2, %v1064_v43  ;;  %v1051_v46 = vadd.f32 %v1537_v15, %v1050_v44 }
 0x205   :  { %v960_v47 = vld [vmem:[#allocation2 + $0x20] sm:$0xff]  ;;  %v961_v48 = vld [vmem:[#allocation2 + $0x28] sm:$0xff] }
 0x206   :  { %v1094_v49 = vmax.f32 %v1064_v43, %v1083_v45  ;;  %v1078_v50 = vmul.f32 0.2, %v1051_v46  ;;  %v969_v51 = vpack.c.bf16 %v961_v48, %v960_v47  ;;  %v966_v52 = vld [vmem:[#allocation2 + $0x50] sm:$0x3] }
 0x207   :  { %v972_v54 = vpack.c.bf16 %v966_v52, %v966_v52 }
 0x208   :  { %1105 = vst [vmem:[%s1780_s6 + $0x30] sm:$0xff] %v1094_v49  ;;  %v1089_v55 = vmax.f32 %v1051_v46, %v1078_v50  ;;  %1057 = vmatmul.bf16.gmra.mxu0 %v969_v51 }
 0x209   :  { %1072 = vmatmul.bf16.gmra.mxu3 %v972_v54  ;;  %v1065_v56 = vpop.f32.mrf.mxu3 }
 0x20a   :  { %1100 = vst [vmem:[%s1780_s6 + $0x8] sm:$0xff] %v1089_v55  ;;  %v1066_v57 = vadd.f32 %v1537_v15, %v1065_v56 }
 0x20b   :  { %v1053_v58 = vpop.f32.mrf.mxu0 }
 0x20c   :  { %v1084_v59 = vmul.f32 0.2, %v1066_v57  ;;  %v1054_v60 = vadd.f32 %v1537_v15, %v1053_v58 }
 0x20e   :  { %v1095_v61 = vmax.f32 %v1066_v57, %v1084_v59  ;;  %v1079_v62 = vmul.f32 0.2, %v1054_v60 }
 0x210   :  { %1106 = vst [vmem:[%s1780_s6 + $0x38] sm:$0xff] %v1095_v61  ;;  %v1090_v63 = vmax.f32 %v1054_v60, %v1079_v62 }
 0x211   :  { %v1068_v1 = vpop.f32.mrf.mxu3 }
 0x212   :  { %1101 = vst [vmem:[%s1780_s6 + $0x10] sm:$0xff] %v1090_v63  ;;  %v1069_v2 = vadd.f32 %v1537_v15, %v1068_v1 }
 0x213   :  { %v1055_v3 = vpop.f32.mrf.mxu0 }
 0x214   :  { %v1085_v5 = vmul.f32 0.2, %v1069_v2  ;;  %v1056_v6 = vadd.f32 %v1537_v15, %v1055_v3 }
 0x216   :  { %v1096_v7 = vmax.f32 %v1069_v2, %v1085_v5  ;;  %v1080_v8 = vmul.f32 0.2, %v1056_v6 }
 0x218   :  { %1107 = vst [vmem:[%s1780_s6 + $0x40] sm:$0xff] %v1096_v7  ;;  %v1091_v9 = vmax.f32 %v1056_v6, %v1080_v8 }
 0x219   :  { %v1070_v10 = vpop.f32.mrf.mxu3 }
 0x21a   :  { %1102 = vst [vmem:[%s1780_s6 + $0x18] sm:$0xff] %v1091_v9  ;;  %v1071_v11 = vadd.f32 %v1537_v15, %v1070_v10 }
 0x21c   :  { %v1086_v12 = vmul.f32 0.2, %v1071_v11 }
 0x21e   :  { %v1097_v13 = vmax.f32 %v1071_v11, %v1086_v12 }
 0x220   :  { %1108 = vst [vmem:[%s1780_s6 + $0x48] sm:$0xff] %v1097_v13 }
 0x285   :  { %v1058_v14 = vpop.f32.mrf.mxu0 }
 0x286   :  { %v1059_v16 = vadd.f32 %v1537_v15, %v1058_v14 }
 0x288   :  { %v1081_v17 = vmul.f32 0.2, %v1059_v16 }
 0x28a   :  { %v1092_v18 = vmax.f32 %v1059_v16, %v1081_v17 }
 0x28c   :  { %1103 = vst [vmem:[%s1780_s6 + $0x20] sm:$0xff] %v1092_v18  ;;  %v1073_v19 = vpop.f32.mrf.mxu3 }
 0x28d   :  { %v1074_v20 = vadd.f32 %v1537_v15, %v1073_v19  ;;  %v1060_v21 = vpop.f32.mrf.mxu0 }
 0x28e   :  { %v1061_v22 = vadd.f32 %v1537_v15, %v1060_v21 }
 0x28f   :  { %v1087_v23 = vmul.f32 0.2, %v1074_v20 }
 0x290   :  { %v1082_v24 = vmul.f32 0.2, %v1061_v22 }
 0x291   :  { %v1098_v26 = vmax.f32 %v1074_v20, %v1087_v23 }
 0x292   :  { %v1093_v28 = vmax.f32 %v1061_v22, %v1082_v24 }
 0x293   :  { %1109 = vst [vmem:[%s1780_s6 + $0x50] sm:$0x3] %v1098_v26 }
 0x294   :  { %1104 = vst [vmem:[%s1780_s6 + $0x28] sm:$0xff] %v1093_v28  ;;  %v1075_v29 = vpop.f32.mrf.mxu3 }
 0x295   :  { %1114 = vsyncpa [#allocation4], 1 }
 0x296   :  { %1115 = vsyncpa [#allocation6], 1 }

</bundles_post_ra>
